<compile_context>
chip_gen: v7x
topology: tpu7x:2x2x1
jax: 0.10.0
libtpu: 0.0.40
codegen_flags: <defaults>
</compile_context>

<pallas_src>
import functools

import jax
import jax.numpy as jnp
from jax.experimental import pallas as pl
from jax.experimental.pallas import tpu as pltpu


def _round_up(x, m):
    return (x + m - 1) // m * m


# ---------------------------------------------------------------------------
# Fused matmul kernel:  out = act((A @ W) [* col_scale] [+ bias] [+ residual])
# Full-K blocks -> one pass per output tile, no accumulator scratch or init branch.
# W may be int8 (dequantised in-kernel, per-column scale applied in the epilogue).
# ---------------------------------------------------------------------------
def _mm_kernel(*refs, relu, has_scale, has_bias, has_residual):
    it = iter(refs)
    a_ref = next(it)
    b_ref = next(it)
    scale_ref = next(it) if has_scale else None
    bias_ref = next(it) if has_bias else None
    r_ref = next(it) if has_residual else None
    o_ref = next(it)

    b = b_ref[...]
    if b.dtype == jnp.int8:
        b = b.astype(jnp.bfloat16)        # VPU dequant-cast, hidden under weight DMA
    y = jnp.dot(a_ref[...], b, preferred_element_type=jnp.float32)
    if scale_ref is not None:
        y = y * scale_ref[...]
    if bias_ref is not None:
        y = y + bias_ref[...]
    if r_ref is not None:
        y = y + r_ref[...].astype(jnp.float32)
    if relu:
        y = jnp.maximum(y, 0.0)
    o_ref[...] = y.astype(o_ref.dtype)


def _pick_tiles(M, N):
    """Tile sizes: tm multiple of 16 (or full dim), tn multiple of 128 (or full dim).
    Avoid a (1,1) grid so the DMA pipeline and both v7x TensorCores stay busy."""
    tm = M if M <= 256 else 256
    gm = pl.cdiv(M, tm)
    if N % 128 != 0:
        return tm, gm, N, 1
    tn = N
    cand = 2048
    while cand >= 128:                    # widest tile <= 2048 that divides N
        if N % cand == 0:
            tn = cand
            break
        cand -= 128
    if gm * (N // tn) == 1:               # grid-collapse avoidance
        for c in (N // 4, N // 2):
            if c >= 128 and c % 128 == 0:
                tn = c
                break
    return tm, gm, tn, N // tn


@functools.partial(jax.jit, static_argnames=("relu", "out_dtype"))
def matmul_fused(a, w, scale=None, bias=None, residual=None, *,
                 relu=False, out_dtype=jnp.bfloat16):
    """act((a @ w) [* scale] [+ bias] [+ residual]) with f32 MXU accumulation.

    a:        (M, K) bf16 activations
    w:        (K, N) bf16 weight (BN scale folded) or int8 quantised weight
    scale:    (1, N) f32 per-column dequant scale (int8 weights)
    bias:     (1, N) f32 bias / BN shift
    residual: (M, N) bf16, added before the ReLU
    """
    M, K = a.shape
    K2, N = w.shape
    assert K == K2
    tm, gm, tn, gn = _pick_tiles(M, N)

    args = [a, w]
    in_specs = [
        pl.BlockSpec((tm, K), lambda i, j: (i, 0)),
        pl.BlockSpec((K, tn), lambda i, j: (0, j)),
    ]
    if scale is not None:
        args.append(scale)
        in_specs.append(pl.BlockSpec((1, tn), lambda i, j: (0, j)))
    if bias is not None:
        args.append(bias)
        in_specs.append(pl.BlockSpec((1, tn), lambda i, j: (0, j)))
    if residual is not None:
        args.append(residual)
        in_specs.append(pl.BlockSpec((tm, tn), lambda i, j: (i, j)))

    return pl.pallas_call(
        functools.partial(_mm_kernel, relu=relu,
                          has_scale=scale is not None,
                          has_bias=bias is not None,
                          has_residual=residual is not None),
        out_shape=jax.ShapeDtypeStruct((M, N), out_dtype),
        grid=(gm, gn),
        in_specs=in_specs,
        out_specs=pl.BlockSpec((tm, tn), lambda i, j: (i, j)),
        compiler_params=pltpu.CompilerParams(
            dimension_semantics=("parallel", "parallel")),
    )(*args)


# ---------------------------------------------------------------------------
# Row-tiled max-reduce over pooling taps: (T, R, L) -> (R, L), L lane-dense.
# ---------------------------------------------------------------------------
def _max_stack_kernel(x_ref, o_ref):
    m = x_ref[0]
    for i in range(1, x_ref.shape[0]):
        m = jnp.maximum(m, x_ref[i])
    o_ref[...] = m


@jax.jit
def _max_over_stack(stacked):
    T, R, L = stacked.shape
    budget = 8 * 1024 * 1024
    nbytes = T * R * L * stacked.dtype.itemsize
    if nbytes <= budget:
        tr = R
    else:
        tr = max(16, min(R, budget // (T * L * stacked.dtype.itemsize)) // 16 * 16)
    return pl.pallas_call(
        _max_stack_kernel,
        out_shape=jax.ShapeDtypeStruct((R, L), stacked.dtype),
        grid=(pl.cdiv(R, tr),),
        in_specs=[pl.BlockSpec((T, tr, L), lambda i: (0, i, 0))],
        out_specs=pl.BlockSpec((tr, L), lambda i: (i, 0)),
        compiler_params=pltpu.CompilerParams(dimension_semantics=("parallel",)),
    )(stacked)


# ---------------------------------------------------------------------------
# Pallas col2im for ConvTranspose2d(stride=1): accumulate the K x K patches of all
# FH*FW feature positions into the (Cout, OH, OW) output, entirely in VMEM.
# (Only used when FH*FW > 1; 1x1 feature maps need no overlap-add.)
# ---------------------------------------------------------------------------
def _col2im_kernel(cols_ref, o_ref, *, taps, FW, K):
    o_ref[...] = jnp.zeros_like(o_ref)
    for t in range(taps):                 # static unroll: static (misaligned) slices
        h, w = divmod(t, FW)
        o_ref[0, :, h:h + K, w:w + K] += cols_ref[0, t]


@functools.partial(jax.jit, static_argnames=("FH", "FW", "K"))
def _col2im(cols5, bias, *, FH, FW, K):
    B, taps, Cout, _, _ = cols5.shape
    OH, OW = FH - 1 + K, FW - 1 + K
    out = pl.pallas_call(
        functools.partial(_col2im_kernel, taps=taps, FW=FW, K=K),
        out_shape=jax.ShapeDtypeStruct((B, Cout, OH, OW), jnp.float32),
        grid=(B,),
        in_specs=[pl.BlockSpec((1, taps, Cout, K, K), lambda b: (b, 0, 0, 0, 0))],
        out_specs=pl.BlockSpec((1, Cout, OH, OW), lambda b: (b, 0, 0, 0)),
        compiler_params=pltpu.CompilerParams(dimension_semantics=("parallel",)),
    )(cols5)
    return out + bias[None, :, None, None]


# ---------------------------------------------------------------------------
# Conv / pool / deconv built on the Pallas kernels (glue = slicing/reshape only)
# ---------------------------------------------------------------------------
def conv2d_bn(x, layer, relu, residual=None):
    """x: (B,H,W,Cin) NHWC bf16; layer: BN-folded bf16 weight (K, cout) + f32 shift."""
    B, H, W, Cin = x.shape
    kh, kw = layer["kh"], layer["kw"]
    s, p, cout = layer["stride"], layer["pad"], layer["cout"]
    OH = (H + 2 * p - kh) // s + 1
    OW = (W + 2 * p - kw) // s + 1
    xp = jnp.pad(x, ((0, 0), (p, p), (p, p), (0, 0))) if p else x
    if kh == 1 and kw == 1 and s == 1 and p == 0:
        A = x.reshape(B * H * W, Cin)                 # free reshape, no HBM copy
    elif kh == 1 and kw == 1:
        A = xp[:, ::s, ::s, :][:, :OH, :OW, :].reshape(B * OH * OW, Cin)
    else:
        # TODO(synk): fold the kh*kw taps into the matmul grid (shifted windows via
        # manual DMA) to avoid materialising the bf16 im2col patches in HBM.
        cols = [xp[:, i:i + (OH - 1) * s + 1:s, j:j + (OW - 1) * s + 1:s, :]
                for i in range(kh) for j in range(kw)]
        A = jnp.concatenate(cols, axis=-1).reshape(B * OH * OW, kh * kw * Cin)
    res = residual.reshape(B * OH * OW, cout) if residual is not None else None
    out = matmul_fused(A, layer["w"], bias=layer["b"], residual=res, relu=relu,
                       out_dtype=jnp.bfloat16)
    return out.reshape(B, OH, OW, cout)


def maxpool_3x3_s2_p1(x):
    B, H, W, C = x.shape
    OH = (H + 2 - 3) // 2 + 1
    OW = (W + 2 - 3) // 2 + 1
    xp = jnp.pad(x, ((0, 0), (1, 1), (1, 1), (0, 0)), constant_values=-jnp.inf)
    slabs = [xp[:, i:i + (OH - 1) * 2 + 1:2, j:j + (OW - 1) * 2 + 1:2, :]
             .reshape(B * OH, OW * C)                 # lane-dense (OW*C >= 128)
             for i in range(3) for j in range(3)]
    stacked = jnp.stack(slabs, axis=0)                # (9, B*OH, OW*C) bf16
    return _max_over_stack(stacked).reshape(B, OH, OW, C)


def conv_transpose2d(feat, p):
    """ConvTranspose2d(2048, 5, 109, stride=1). feat: (B, FH, FW, 2048) bf16."""
    B, FH, FW, Cin = feat.shape
    Cout, K = p["cout"], p["ksize"]
    N = Cout * K * K
    A = feat.reshape(B * FH * FW, Cin)
    cols = matmul_fused(A, p["w"], scale=p["scale"], relu=False,
                        out_dtype=jnp.float32)[:, :N]
    if FH == 1 and FW == 1:                           # no overlap-add needed
        return cols.reshape(B, Cout, K, K) + p["bias"][None, :, None, None]
    cols5 = cols.reshape(B, FH * FW, Cout, K, K)
    return _col2im(cols5, p["bias"], FH=FH, FW=FW, K=K)


# ---------------------------------------------------------------------------
# Deterministic parameter construction (synthetic ResNet-50 + head).
# Weights are BN-folded / transposed / quantised ONCE here.
# ---------------------------------------------------------------------------
def _make_conv(w_key, bn_key, cout, cin, kh, kw, stride, pad, eps=1e-5):
    fan_in = cin * kh * kw
    w = jax.random.normal(w_key, (cout, cin, kh, kw), jnp.float32) * (2.0 / fan_in) ** 0.5
    k1, k2 = jax.random.split(bn_key)
    gamma = 1.0 + 0.1 * jax.random.normal(k1, (cout,), jnp.float32)
    beta = 0.05 * jax.random.normal(k2, (cout,), jnp.float32)
    mean = jnp.zeros((cout,), jnp.float32)
    var = jnp.ones((cout,), jnp.float32)
    scale = gamma / jnp.sqrt(var + eps)               # inference-form BN
    shift = beta - mean * scale
    Kdim = kh * kw * cin
    Wm = jnp.transpose(w, (2, 3, 1, 0)).reshape(Kdim, cout) * scale[None, :]
    return {"w": Wm.astype(jnp.bfloat16),             # (K, cout), unpadded bf16
            "b": shift.reshape(1, cout).astype(jnp.float32),
            "cout": cout, "kh": kh, "kw": kw, "stride": stride, "pad": pad}


def _make_deconv(w_key, b_key, cin=2048, cout=5, ksize=109, tn=2048):
    w = jax.random.normal(w_key, (cin, cout, ksize, ksize), jnp.float32) * (1.0 / cin) ** 0.5
    b = 0.01 * jax.random.normal(b_key, (cout,), jnp.float32)
    N = cout * ksize * ksize
    Wm = w.reshape(cin, N)
    # Symmetric per-column int8 quantisation; scale is applied in the matmul epilogue.
    amax = jnp.max(jnp.abs(Wm), axis=0)
    scale = jnp.where(amax > 0, amax / 127.0, 1.0)
    q = jnp.clip(jnp.round(Wm / scale[None, :]), -127, 127).astype(jnp.int8)
    Np = _round_up(N, tn)
    w_q = jnp.zeros((cin, Np), jnp.int8).at[:, :N].set(q)
    s_p = jnp.zeros((1, Np), jnp.float32).at[0, :N].set(scale)
    return {"w": w_q, "scale": s_p, "bias": b, "cout": cout, "ksize": ksize}


def init_params(seed=0):
    base = jax.random.PRNGKey(seed)
    ctr = [0]

    def nk():
        ctr[0] += 1
        return jax.random.fold_in(base, ctr[0])

    params = {"conv1": _make_conv(nk(), nk(), 64, 3, 7, 7, stride=2, pad=3)}
    cfg = [(64, 3, 1), (128, 4, 2), (256, 6, 2), (512, 3, 2)]
    layers = []
    in_c = 64
    for planes, nblocks, stride in cfg:
        blocks = []
        for bi in range(nblocks):
            s = stride if bi == 0 else 1
            blk = {
                "c1": _make_conv(nk(), nk(), planes, in_c, 1, 1, 1, 0),
                "c2": _make_conv(nk(), nk(), planes, planes, 3, 3, s, 1),
                "c3": _make_conv(nk(), nk(), planes * 4, planes, 1, 1, 1, 0),
            }
            if s != 1 or in_c != planes * 4:
                blk["down"] = _make_conv(nk(), nk(), planes * 4, in_c, 1, 1, s, 0)
            blocks.append(blk)
            in_c = planes * 4
        layers.append(blocks)
    params["layers"] = layers
    # ConvTranspose2d(2048, 5, kernel_size=109, stride=1) -- int8 + per-column scale.
    params["deconv"] = _make_deconv(nk(), nk())
    # NOTE: self.l0 = nn.Linear(2048, 10) exists in __init__ but is unused in forward.
    return params


# ---------------------------------------------------------------------------
# Forward pass (matches FaceKeypointResNet50.forward)
# ---------------------------------------------------------------------------
def bottleneck(x, blk):
    identity = conv2d_bn(x, blk["down"], relu=False) if "down" in blk else x
    out = conv2d_bn(x, blk["c1"], relu=True)
    out = conv2d_bn(out, blk["c2"], relu=True)
    # conv3 + BN + residual add + ReLU fused into one Pallas epilogue.
    out = conv2d_bn(out, blk["c3"], relu=True, residual=identity)
    return out


def face_keypoint_resnet50_forward(params, x_nchw):
    x = jnp.transpose(x_nchw, (0, 2, 3, 1)).astype(jnp.bfloat16)   # NCHW -> NHWC bf16
    x = conv2d_bn(x, params["conv1"], relu=True)
    x = maxpool_3x3_s2_p1(x)
    for blocks in params["layers"]:
        for blk in blocks:
            x = bottleneck(x, blk)
    # x is the ResNet-50 feature map (B, H/32, W/32, 2048)
    return conv_transpose2d(x, params["deconv"])   # NCHW: (B, 5, H/32-1+109, W/32-1+109)


if __name__ == "__main__":
    params = init_params(0)
    x = jax.random.normal(jax.random.PRNGKey(0), (2, 3, 32, 32), jnp.float32)
    out = face_keypoint_resnet50_forward(params, x)
    out = jax.block_until_ready(out)
    assert out.shape == (2, 5, 109, 109), out.shape
    assert bool(jnp.all(jnp.isfinite(out)))
    print("KERNEL_OK")
</pallas_src>

<mosaic_0001>
module attributes {stable_mosaic.version = 11 : i64} {
  func.func @_mm_kernel(%arg0: i32, %arg1: i32, %arg2: memref<256x147xbf16, #tpu.memory_space<vmem>>, %arg3: memref<147x64xbf16, #tpu.memory_space<vmem>>, %arg4: memref<1x64xf32, #tpu.memory_space<vmem>>, %arg5: memref<256x64xbf16, #tpu.memory_space<vmem>>) attributes {dimension_semantics = [#tpu.dimension_semantics<parallel>, #tpu.dimension_semantics<parallel>], iteration_bounds = array<i64: 2, 1>, scalar_prefetch = 0 : i64, scratch_operands = 0 : i64, tpu.core_type = #tpu.core_type<tc>, window_params = [{transform_indices = @transform_0, window_bounds = array<i64: 256, 147>}, {transform_indices = @transform_1, window_bounds = array<i64: 147, 64>}, {transform_indices = @transform_2, window_bounds = array<i64: 1, 64>}, {transform_indices = @transform_3, window_bounds = array<i64: 256, 64>}]} {
    %c0 = arith.constant 0 : index
    %c0_0 = arith.constant 0 : index
    %0 = vector.load %arg3[%c0, %c0_0] : memref<147x64xbf16, #tpu.memory_space<vmem>>, vector<147x64xbf16>
    %c0_1 = arith.constant 0 : index
    %c0_2 = arith.constant 0 : index
    %1 = vector.load %arg2[%c0_1, %c0_2] : memref<256x147xbf16, #tpu.memory_space<vmem>>, vector<256x147xbf16>
    %cst = arith.constant dense<0.000000e+00> : vector<256x64xf32>
    %2 = tpu.matmul %1, %0, %cst {dimension_numbers = #tpu.dot_dimension_numbers<[1], [0], [0], [1], [0, 0, 1, 1], [], []>} : vector<256x147xbf16>, vector<147x64xbf16>, vector<256x64xf32> -> vector<256x64xf32>
    %c0_3 = arith.constant 0 : index
    %c0_4 = arith.constant 0 : index
    %3 = vector.load %arg4[%c0_3, %c0_4] : memref<1x64xf32, #tpu.memory_space<vmem>>, vector<1x64xf32>
    %4 = vector.broadcast %3 : vector<1x64xf32> to vector<256x64xf32>
    %5 = arith.addf %2, %4 : vector<256x64xf32>
    %cst_5 = arith.constant 0.000000e+00 : f32
    %6 = vector.broadcast %cst_5 : f32 to vector<256x64xf32>
    %7 = arith.maximumf %5, %6 : vector<256x64xf32>
    %8 = arith.truncf %7 : vector<256x64xf32> to vector<256x64xbf16>
    %c0_6 = arith.constant 0 : index
    %c0_7 = arith.constant 0 : index
    %9 = vector.load %arg5[%c0_6, %c0_7] : memref<256x64xbf16, #tpu.memory_space<vmem>>, vector<256x64xbf16>
    tpu.vector_store %arg5[%c0_6, %c0_7], %8 {strides = array<i32>} : memref<256x64xbf16, #tpu.memory_space<vmem>>, vector<256x64xbf16>,
    return
  }
  func.func @transform_0(%arg0: i32, %arg1: i32) -> (i32, i32) {
    %c0_i32 = arith.constant 0 : i32
    %c0_i32_0 = arith.constant 0 : i32
    return %arg0, %c0_i32 : i32, i32
  }
  func.func @transform_1(%arg0: i32, %arg1: i32) -> (i32, i32) {
    %c0_i32 = arith.constant 0 : i32
    %c0_i32_0 = arith.constant 0 : i32
    return %c0_i32, %arg1 : i32, i32
  }
  func.func @transform_2(%arg0: i32, %arg1: i32) -> (i32, i32) {
    %c0_i32 = arith.constant 0 : i32
    %c0_i32_0 = arith.constant 0 : i32
    return %c0_i32, %arg1 : i32, i32
  }
  func.func @transform_3(%arg0: i32, %arg1: i32) -> (i32, i32) {
    %c0_i32 = arith.constant 0 : i32
    return %arg0, %arg1 : i32, i32
  }
}

</mosaic_0001>

<bundles_post_ra>
// kernel: matmul_fused.1
= control target key start
LH: loop header
LB: loop body
LE: loop exit
PB: predicated region body
PF: predicated region fallthrough
CT: control target
= control target key end

     0   :  { %s1288_s12 = smov 0   ;;  %s1290_s13 = smov 0   ;;  %s1508_s0 = inlined_call_operand.vmem [shape: bf16[512,147], index: 0, kind: input, shape index: {}]   ;;  %s1509_s1 = inlined_call_operand.vmem [shape: bf16[147,64], index: 1, kind: input, shape index: {}]   ;;  %s1510_s2 = inlined_call_operand.vmem [shape: f32[1,64], index: 2, kind: input, shape index: {}]   ;;  %s1511_s3 = inlined_call_operand.vmem [shape: bf16[512,64], index: 3, kind: output, shape index: {}]  }
   0x1   :  { %s1292_s14 = smov 0  }
   0x2 LB: > { %s25_s15 = sadd.s32 1, %s1260_s13  ;;  %p1006_p0 = scmp.ge.s32.totalorder %s1264_s14, 1  ;;  %s1264_s14 = sphi %s1292_s14, %s13_s14   ;;  %s1260_s13 = sphi %s1290_s13, %s1513_s13   ;;  %s1256_s12 = sphi %s1288_s12, %s1512_s12  }
   0x3   : > { %p27_p1 = scmp.ge.s32.totalorder %s25_s15, 2  ;;  %p170_p2 = scmp.lt.s32.totalorder %s1264_s14, 3 }
   0x5   : > { %s1515_s15 = smov (%p27_p1, %s25_s15), 0  ;;  %p171_p3 = pnand %p1006_p0, %p170_p2 }
   0x6   : > { %v1184_v0 = vld [vmem:[%s1509_s1] sm:$0xff] (!%p171_p3)   ;;  %v1266_v1 = vmov (!%p171_p3), 0   ;;  %v1185_v2 = vld [vmem:[%s1509_s1 + $0x8] sm:$0xff] (!%p171_p3)   ;;  %v1186_v3 = vld [vmem:[%s1509_s1 + $0x10] sm:$0xff] (!%p171_p3)   ;;  %s1007_s22 = sshll.u32 (!%p171_p3), %s1256_s12, 5  ;;  %vm488_vm0 = vcmask (!%p171_p3), 154624  }
   0x7   : > { %174 = sbr.rel (%p171_p3) target bundleno = 324 (0x144), region = 32  ;;  %544 = vmatprep.subr.bf16.mxu0 (!%p171_p3), %v1266_v1  ;;  %1138 = vmatprep.subr.bf16.mxu1 (!%p171_p3), %v1266_v1  ;;  %p206_p4 = scmp.lt.s32.totalorder (!%p171_p3), %s1007_s22, 63  ;;  %v1187_v4 = vld [vmem:[%s1509_s1 + $0x18] sm:$0xff] (!%p171_p3)   ;;  %v1188_v5 = vld [vmem:[%s1509_s1 + $0x20] sm:$0xff] (!%p171_p3)   ;;  %v1189_v8 = vld [vmem:[%s1509_s1 + $0x28] sm:$0xff] (!%p171_p3)   ;;  %vm537_vm1 = vcmask (!%p171_p3), 1040384  }
   0x8   : > { %545 = vmatpush1.bf16.msra.mxu0 (!%p171_p3), %v1184_v0  ;;  %1148 = vmatpush1.bf16.msra.mxu1 (!%p171_p3), %v1184_v0  ;;  %v1190_v9 = vld [vmem:[%s1509_s1 + $0x30] sm:$0xff] (!%p171_p3)   ;;  %v1191_v10 = vld [vmem:[%s1509_s1 + $0x38] sm:$0xff] (!%p171_p3)   ;;  %vm538_vm2 = vcmask (!%p171_p3), 1041408   ;;  %v1267_v11 = vmov (!%p171_p3), 65535   ;;  %v1192_v13 = vld [vmem:[%s1509_s1 + $0x40] sm:$0xff] (!%p171_p3)   ;;  %vm865_vm3 = vcmask (!%p171_p3), 519168  }
   0x9   : > { %546 = vmatprep.subr.bf16.mxu0 (!%p171_p3), %v1266_v1  ;;  %1139 = vmatprep.subr.bf16.mxu1 (!%p171_p3), %v1266_v1  ;;  %v539_v12 = vsel (!%p171_p3), %vm537_vm1, 4294967295, %v1267_v11  ;;  %v1193_v14 = vld [vmem:[%s1509_s1 + $0x48] ss:$0 sps:$4 sm:$0x33] (!%p171_p3)   ;;  %v1395_v47 = vld [vmem:[%s1510_s2] ss:$0 sm:$0xff] (!%p171_p3) }
   0xa   : > { %v540_v15 = vsel (!%p171_p3), %vm538_vm2, %v539_v12, 0 }
   0xb   : > { %v542_v16 = vand.u32 (!%p171_p3), %v1193_v14, %v540_v15 }
   0xc   : > { %547 = vmatpush1.bf16.msra.mxu0 (!%p171_p3), %v1185_v2  ;;  %1149 = vmatpush1.bf16.msra.mxu1 (!%p171_p3), %v1185_v2 }
   0xd   : > { %548 = vmatprep.subr.bf16.mxu0 (!%p171_p3), %v1266_v1  ;;  %1140 = vmatprep.subr.bf16.mxu1 (!%p171_p3), %v1266_v1 }
   0xe   : > { %s1517_s22 = smov (!%p206_p4, %s1007_s22), 63 }
   0xf   : > { %s1105_s25 = sshll.u32 %s1517_s22, 3  ;;  %s1011_s19 = sshll.u32 %s1517_s22, 2 }
  0x10   : > { %549 = vmatpush1.bf16.msra.mxu0 %v1186_v3  ;;  %1150 = vmatpush1.bf16.msra.mxu1 %v1186_v3  ;;  %s1324_s28 = scalar_lea.vmem %s1508_s0, %s1105_s25  ;;  %s1405_s22 = scalar_lea.vmem %s1511_s3, %s1011_s19 }
  0x11   : > { %550 = vmatprep.subr.bf16.mxu0 %v1266_v1  ;;  %1141 = vmatprep.subr.bf16.mxu1 %v1266_v1  ;;  %v1196_v6 = vld [vmem:[%s1324_s28 + $0x4] ss:$8 sps:$4 sm:$0xff]   ;;  %v1194_v17 = vld [vmem:[%s1324_s28] ss:$8 sps:$4 sm:$0xff]   ;;  %v1200_v19 = vld [vmem:[%s1324_s28 + $0x14] ss:$8 sps:$4 sm:$0xff]  }
  0x12   : > { %v1199_v7 = vld [vmem:[%s1324_s28 + $0x84] ss:$8 sps:$4 sm:$0xff]   ;;  %1055 = vmatprep.mubr.msk.bf16.mxu0 %vm488_vm0, %v1196_v6  ;;  %v1197_v18 = vld [vmem:[%s1324_s28 + $0x80] ss:$8 sps:$4 sm:$0xff]   ;;  %v1202_v20 = vld [vmem:[%s1324_s28 + $0x94] ss:$8 sps:$4 sm:$0xff]  }
  0x13   : > { %1063 = vmatprep.mubr.msk.bf16.mxu1 %vm488_vm0, %v1199_v7  ;;  %v1204_v21 = vld [vmem:[%s1324_s28 + $0x10] ss:$8 sps:$4 sm:$0xff]   ;;  %v1206_v23 = vld [vmem:[%s1324_s28 + $0x24] ss:$8 sps:$4 sm:$0xff]   ;;  %v1210_v25 = vld [vmem:[%s1324_s28 + $0x20] ss:$8 sps:$4 sm:$0xff]  }
  0x14   : > { %551 = vmatpush1.bf16.msra.mxu0 %v1187_v4  ;;  %1151 = vmatpush1.bf16.msra.mxu1 %v1187_v4  ;;  %v1205_v22 = vld [vmem:[%s1324_s28 + $0x90] ss:$8 sps:$4 sm:$0xff]   ;;  %v1208_v24 = vld [vmem:[%s1324_s28 + $0xa4] ss:$8 sps:$4 sm:$0xff]   ;;  %v1211_v26 = vld [vmem:[%s1324_s28 + $0xa0] ss:$8 sps:$4 sm:$0xff]  }
  0x15   : > { %552 = vmatprep.subr.bf16.mxu0 %v1266_v1  ;;  %1142 = vmatprep.subr.bf16.mxu1 %v1266_v1  ;;  %v1212_v27 = vld [vmem:[%s1324_s28 + $0x34] ss:$8 sps:$4 sm:$0xff]   ;;  %v1216_v29 = vld [vmem:[%s1324_s28 + $0x30] ss:$8 sps:$4 sm:$0xff]   ;;  %v1218_v31 = vld [vmem:[%s1324_s28 + $0x44] ss:$8 sps:$4 sm:$0xff]  }
  0x16   : > { %v1214_v28 = vld [vmem:[%s1324_s28 + $0xb4] ss:$8 sps:$4 sm:$0xff]   ;;  %v1217_v30 = vld [vmem:[%s1324_s28 + $0xb0] ss:$8 sps:$4 sm:$0xff]   ;;  %v1220_v32 = vld [vmem:[%s1324_s28 + $0xc4] ss:$8 sps:$4 sm:$0xff]  }
  0x17   : > { %v1222_v33 = vld [vmem:[%s1324_s28 + $0x40] ss:$8 sps:$4 sm:$0xff]   ;;  %v1224_v35 = vld [vmem:[%s1324_s28 + $0x54] ss:$8 sps:$4 sm:$0xff]   ;;  %v1228_v37 = vld [vmem:[%s1324_s28 + $0x50] ss:$8 sps:$4 sm:$0xff]  }
  0x18   : > { %553 = vmatpush1.bf16.msra.mxu0 %v1188_v5  ;;  %1152 = vmatpush1.bf16.msra.mxu1 %v1188_v5  ;;  %v1223_v34 = vld [vmem:[%s1324_s28 + $0xc0] ss:$8 sps:$4 sm:$0xff]   ;;  %v1226_v36 = vld [vmem:[%s1324_s28 + $0xd4] ss:$8 sps:$4 sm:$0xff]   ;;  %v1229_v38 = vld [vmem:[%s1324_s28 + $0xd0] ss:$8 sps:$4 sm:$0xff]  }
  0x19   : > { %554 = vmatprep.subr.bf16.mxu0 %v1266_v1  ;;  %1143 = vmatprep.subr.bf16.mxu1 %v1266_v1  ;;  %v1230_v39 = vld [vmem:[%s1324_s28 + $0x64] ss:$8 sps:$4 sm:$0xff]   ;;  %v1234_v41 = vld [vmem:[%s1324_s28 + $0x60] ss:$8 sps:$4 sm:$0xff]   ;;  %v1236_v43 = vld [vmem:[%s1324_s28 + $0x74] ss:$8 sps:$4 sm:$0xff]  }
  0x1a   : > { %v1232_v40 = vld [vmem:[%s1324_s28 + $0xe4] ss:$8 sps:$4 sm:$0xff]   ;;  %v1235_v42 = vld [vmem:[%s1324_s28 + $0xe0] ss:$8 sps:$4 sm:$0xff]   ;;  %v1238_v44 = vld [vmem:[%s1324_s28 + $0xf4] ss:$8 sps:$4 sm:$0xff]  }
  0x1b   : > { %v1240_v45 = vld [vmem:[%s1324_s28 + $0x70] ss:$8 sps:$4 sm:$0xff]  }
  0x1c   : > { %555 = vmatpush1.bf16.msra.mxu0 %v1189_v8  ;;  %1153 = vmatpush1.bf16.msra.mxu1 %v1189_v8  ;;  %v1241_v46 = vld [vmem:[%s1324_s28 + $0xf0] ss:$8 sps:$4 sm:$0xff]  }
  0x1d   : > { %556 = vmatprep.subr.bf16.mxu0 %v1266_v1  ;;  %1144 = vmatprep.subr.bf16.mxu1 %v1266_v1 }
  0x20   : > { %557 = vmatpush1.bf16.msra.mxu0 %v1190_v9  ;;  %1154 = vmatpush1.bf16.msra.mxu1 %v1190_v9 }
  0x21   : > { %558 = vmatprep.subr.bf16.mxu0 %v1266_v1  ;;  %1145 = vmatprep.subr.bf16.mxu1 %v1266_v1 }
  0x24   : > { %559 = vmatpush1.bf16.msra.mxu0 %v1191_v10  ;;  %1155 = vmatpush1.bf16.msra.mxu1 %v1191_v10 }
  0x25   : > { %560 = vmatprep.subr.bf16.mxu0 %v1266_v1  ;;  %1146 = vmatprep.subr.bf16.mxu1 %v1266_v1 }
  0x28   : > { %561 = vmatpush1.bf16.msra.mxu0 %v1192_v13  ;;  %1156 = vmatpush1.bf16.msra.mxu1 %v1192_v13 }
  0x29   : > { %562 = vmatprep.subr.bf16.mxu0 %v1266_v1  ;;  %1147 = vmatprep.subr.bf16.mxu1 %v1266_v1 }
  0x2c   : > { %563 = vmatpush1.bf16.msra.mxu0 %v542_v16  ;;  %1157 = vmatpush1.bf16.msra.mxu1 %v542_v16 }
  0x2f   : > { %577 = vmatmul.mubr.bf16.vlgmr.msra.gmra.mrb[0].mxu0 %v1194_v17  ;;  %641 = vmatmul.mubr.bf16.vlgmr.msra.gmra.mrb[0].mxu1 %v1197_v18 }
  0x30   : > { %1056 = vmatprep.mubr.msk.bf16.mxu0 %vm488_vm0, %v1200_v19  ;;  %1064 = vmatprep.mubr.msk.bf16.mxu1 %vm488_vm0, %v1202_v20 }
  0x37   : > { %585 = vmatmul.mubr.bf16.gmra.mrb[4].mxu0 %v1204_v21  ;;  %649 = vmatmul.mubr.bf16.gmra.mrb[4].mxu1 %v1205_v22 }
  0x38   : > { %1057 = vmatprep.mubr.msk.bf16.mxu0 %vm488_vm0, %v1206_v23  ;;  %1065 = vmatprep.mubr.msk.bf16.mxu1 %vm488_vm0, %v1208_v24 }
  0x3f   : > { %593 = vmatmul.mubr.bf16.gmra.mrb[8].mxu0 %v1210_v25  ;;  %657 = vmatmul.mubr.bf16.gmra.mrb[8].mxu1 %v1211_v26 }
  0x40   : > { %1058 = vmatprep.mubr.msk.bf16.mxu0 %vm488_vm0, %v1212_v27  ;;  %1066 = vmatprep.mubr.msk.bf16.mxu1 %vm488_vm0, %v1214_v28 }
  0x47   : > { %601 = vmatmul.mubr.bf16.gmra.mrb[12].mxu0 %v1216_v29  ;;  %665 = vmatmul.mubr.bf16.gmra.mrb[12].mxu1 %v1217_v30 }
  0x48   : > { %1059 = vmatprep.mubr.msk.bf16.mxu0 %vm488_vm0, %v1218_v31  ;;  %1067 = vmatprep.mubr.msk.bf16.mxu1 %vm488_vm0, %v1220_v32 }
  0x4f   : > { %609 = vmatmul.mubr.bf16.gmra.mrb[16].mxu0 %v1222_v33  ;;  %673 = vmatmul.mubr.bf16.gmra.mrb[16].mxu1 %v1223_v34 }
  0x50   : > { %1060 = vmatprep.mubr.msk.bf16.mxu0 %vm488_vm0, %v1224_v35  ;;  %1068 = vmatprep.mubr.msk.bf16.mxu1 %vm488_vm0, %v1226_v36 }
  0x57   : > { %617 = vmatmul.mubr.bf16.gmra.mrb[20].mxu0 %v1228_v37  ;;  %681 = vmatmul.mubr.bf16.gmra.mrb[20].mxu1 %v1229_v38 }
  0x58   : > { %1061 = vmatprep.mubr.msk.bf16.mxu0 %vm488_vm0, %v1230_v39  ;;  %1069 = vmatprep.mubr.msk.bf16.mxu1 %vm488_vm0, %v1232_v40 }
  0x5f   : > { %625 = vmatmul.mubr.bf16.gmra.mrb[24].mxu0 %v1234_v41  ;;  %689 = vmatmul.mubr.bf16.gmra.mrb[24].mxu1 %v1235_v42 }
  0x60   : > { %1062 = vmatprep.mubr.msk.bf16.mxu0 %vm488_vm0, %v1236_v43  ;;  %1070 = vmatprep.mubr.msk.bf16.mxu1 %vm488_vm0, %v1238_v44 }
  0x67   : > { %633 = vmatmul.mubr.bf16.gmra.mrb[28].mxu0 %v1240_v45  ;;  %697 = vmatmul.mubr.bf16.gmra.mrb[28].mxu1 %v1241_v46 }
 0x102   : > { %v578_v48 = vpop.f32.mrb[0].mxu0  ;;  %v642_v49 = vpop.f32.mrb[0].mxu1 }
 0x103   : > { %v579_v50 = vadd.f32 %v1395_v47, %v578_v48  ;;  %v643_v51 = vadd.f32 %v1395_v47, %v642_v49  ;;  %v580_v52 = vpop.f32.mrb[1].mxu0  ;;  %v644_v53 = vpop.f32.mrb[1].mxu1 }
 0x104   : > { %v581_v54 = vpop.f32.mrb[2].mxu0  ;;  %v645_v55 = vpop.f32.mrb[2].mxu1 }
 0x105   : > { %v705_v56 = vmax.f32 %v579_v50, 0.0  ;;  %v721_v57 = vmax.f32 %v643_v51, 0.0  ;;  %v582_v58 = vadd.f32 %v1395_v47, %v581_v54  ;;  %v646_v59 = vadd.f32 %v1395_v47, %v645_v55  ;;  %v583_v60 = vpop.f32.mrb[3].mxu0  ;;  %v647_v61 = vpop.f32.mrb[3].mxu1 }
 0x107   : > { %v1106_v62 = vpack.c.bf16 %v705_v56, %v705_v56  ;;  %v1122_v63 = vpack.c.bf16 %v721_v57, %v721_v57  ;;  %v706_v0 = vmax.f32 %v582_v58, 0.0  ;;  %v722_v1 = vmax.f32 %v646_v59, 0.0 }
 0x109   : > { %866 = vst.msk [vmem:[%s1405_s22] sm:$0xf] %vm865_vm3, %v1106_v62  ;;  %882 = vst.msk [vmem:[%s1405_s22 + $0x40] sm:$0xf] %vm865_vm3, %v1122_v63  ;;  %v1107_v2 = vpack.c.bf16 %v706_v0, %v706_v0  ;;  %v1123_v3 = vpack.c.bf16 %v722_v1, %v722_v1 }
 0x10a   : > { %v586_v4 = vpop.f32.mrb[4].mxu0  ;;  %v650_v5 = vpop.f32.mrb[4].mxu1 }
 0x10b   : > { %867 = vst.msk [vmem:[%s1405_s22 + $0x4] sm:$0xf] %vm865_vm3, %v1107_v2  ;;  %883 = vst.msk [vmem:[%s1405_s22 + $0x44] sm:$0xf] %vm865_vm3, %v1123_v3  ;;  %v587_v6 = vadd.f32 %v1395_v47, %v586_v4  ;;  %v651_v7 = vadd.f32 %v1395_v47, %v650_v5  ;;  %v588_v8 = vpop.f32.mrb[5].mxu0  ;;  %v652_v9 = vpop.f32.mrb[5].mxu1 }
 0x10c   : > { %v589_v10 = vpop.f32.mrb[6].mxu0  ;;  %v653_v11 = vpop.f32.mrb[6].mxu1 }
 0x10d   : > { %v707_v12 = vmax.f32 %v587_v6, 0.0  ;;  %v723_v13 = vmax.f32 %v651_v7, 0.0  ;;  %v590_v14 = vadd.f32 %v1395_v47, %v589_v10  ;;  %v654_v15 = vadd.f32 %v1395_v47, %v653_v11  ;;  %v591_v16 = vpop.f32.mrb[7].mxu0  ;;  %v655_v17 = vpop.f32.mrb[7].mxu1 }
 0x10f   : > { %v1108_v18 = vpack.c.bf16 %v707_v12, %v707_v12  ;;  %v1124_v19 = vpack.c.bf16 %v723_v13, %v723_v13  ;;  %v708_v20 = vmax.f32 %v590_v14, 0.0  ;;  %v724_v21 = vmax.f32 %v654_v15, 0.0 }
 0x111   : > { %868 = vst.msk [vmem:[%s1405_s22 + $0x8] sm:$0xf] %vm865_vm3, %v1108_v18  ;;  %884 = vst.msk [vmem:[%s1405_s22 + $0x48] sm:$0xf] %vm865_vm3, %v1124_v19  ;;  %v1109_v22 = vpack.c.bf16 %v708_v20, %v708_v20  ;;  %v1125_v23 = vpack.c.bf16 %v724_v21, %v724_v21 }
 0x112   : > { %v594_v24 = vpop.f32.mrb[8].mxu0  ;;  %v658_v25 = vpop.f32.mrb[8].mxu1 }
 0x113   : > { %869 = vst.msk [vmem:[%s1405_s22 + $0xc] sm:$0xf] %vm865_vm3, %v1109_v22  ;;  %885 = vst.msk [vmem:[%s1405_s22 + $0x4c] sm:$0xf] %vm865_vm3, %v1125_v23  ;;  %v595_v26 = vadd.f32 %v1395_v47, %v594_v24  ;;  %v659_v27 = vadd.f32 %v1395_v47, %v658_v25  ;;  %v596_v28 = vpop.f32.mrb[9].mxu0  ;;  %v660_v29 = vpop.f32.mrb[9].mxu1 }
 0x114   : > { %v597_v30 = vpop.f32.mrb[10].mxu0  ;;  %v661_v31 = vpop.f32.mrb[10].mxu1 }
 0x115   : > { %v709_v32 = vmax.f32 %v595_v26, 0.0  ;;  %v725_v33 = vmax.f32 %v659_v27, 0.0  ;;  %v598_v34 = vadd.f32 %v1395_v47, %v597_v30  ;;  %v662_v35 = vadd.f32 %v1395_v47, %v661_v31  ;;  %v599_v36 = vpop.f32.mrb[11].mxu0  ;;  %v663_v37 = vpop.f32.mrb[11].mxu1 }
 0x117   : > { %v1110_v38 = vpack.c.bf16 %v709_v32, %v709_v32  ;;  %v1126_v39 = vpack.c.bf16 %v725_v33, %v725_v33  ;;  %v710_v40 = vmax.f32 %v598_v34, 0.0  ;;  %v726_v41 = vmax.f32 %v662_v35, 0.0 }
 0x119   : > { %870 = vst.msk [vmem:[%s1405_s22 + $0x10] sm:$0xf] %vm865_vm3, %v1110_v38  ;;  %886 = vst.msk [vmem:[%s1405_s22 + $0x50] sm:$0xf] %vm865_vm3, %v1126_v39  ;;  %v1111_v42 = vpack.c.bf16 %v710_v40, %v710_v40  ;;  %v1127_v43 = vpack.c.bf16 %v726_v41, %v726_v41 }
 0x11a   : > { %v602_v44 = vpop.f32.mrb[12].mxu0  ;;  %v666_v45 = vpop.f32.mrb[12].mxu1 }
 0x11b   : > { %871 = vst.msk [vmem:[%s1405_s22 + $0x14] sm:$0xf] %vm865_vm3, %v1111_v42  ;;  %887 = vst.msk [vmem:[%s1405_s22 + $0x54] sm:$0xf] %vm865_vm3, %v1127_v43  ;;  %v603_v46 = vadd.f32 %v1395_v47, %v602_v44  ;;  %v667_v48 = vadd.f32 %v1395_v47, %v666_v45  ;;  %v604_v49 = vpop.f32.mrb[13].mxu0  ;;  %v668_v50 = vpop.f32.mrb[13].mxu1 }
 0x11c   : > { %v605_v51 = vpop.f32.mrb[14].mxu0  ;;  %v669_v52 = vpop.f32.mrb[14].mxu1 }
 0x11d   : > { %v711_v53 = vmax.f32 %v603_v46, 0.0  ;;  %v727_v54 = vmax.f32 %v667_v48, 0.0  ;;  %v606_v55 = vadd.f32 %v1395_v47, %v605_v51  ;;  %v670_v56 = vadd.f32 %v1395_v47, %v669_v52  ;;  %v607_v57 = vpop.f32.mrb[15].mxu0  ;;  %v671_v58 = vpop.f32.mrb[15].mxu1 }
 0x11f   : > { %v1112_v59 = vpack.c.bf16 %v711_v53, %v711_v53  ;;  %v1128_v60 = vpack.c.bf16 %v727_v54, %v727_v54  ;;  %v712_v61 = vmax.f32 %v606_v55, 0.0  ;;  %v728_v62 = vmax.f32 %v670_v56, 0.0 }
 0x121   : > { %872 = vst.msk [vmem:[%s1405_s22 + $0x18] sm:$0xf] %vm865_vm3, %v1112_v59  ;;  %888 = vst.msk [vmem:[%s1405_s22 + $0x58] sm:$0xf] %vm865_vm3, %v1128_v60  ;;  %v1113_v63 = vpack.c.bf16 %v712_v61, %v712_v61  ;;  %v1129_v0 = vpack.c.bf16 %v728_v62, %v728_v62 }
 0x122   : > { %v610_v1 = vpop.f32.mrb[16].mxu0  ;;  %v674_v2 = vpop.f32.mrb[16].mxu1 }
 0x123   : > { %873 = vst.msk [vmem:[%s1405_s22 + $0x1c] sm:$0xf] %vm865_vm3, %v1113_v63  ;;  %889 = vst.msk [vmem:[%s1405_s22 + $0x5c] sm:$0xf] %vm865_vm3, %v1129_v0  ;;  %v611_v3 = vadd.f32 %v1395_v47, %v610_v1  ;;  %v675_v4 = vadd.f32 %v1395_v47, %v674_v2  ;;  %v612_v5 = vpop.f32.mrb[17].mxu0  ;;  %v676_v6 = vpop.f32.mrb[17].mxu1 }
 0x124   : > { %v613_v7 = vpop.f32.mrb[18].mxu0  ;;  %v677_v8 = vpop.f32.mrb[18].mxu1 }
 0x125   : > { %v713_v9 = vmax.f32 %v611_v3, 0.0  ;;  %v729_v10 = vmax.f32 %v675_v4, 0.0  ;;  %v614_v11 = vadd.f32 %v1395_v47, %v613_v7  ;;  %v678_v12 = vadd.f32 %v1395_v47, %v677_v8  ;;  %v615_v13 = vpop.f32.mrb[19].mxu0  ;;  %v679_v14 = vpop.f32.mrb[19].mxu1 }
 0x127   : > { %v1114_v15 = vpack.c.bf16 %v713_v9, %v713_v9  ;;  %v1130_v16 = vpack.c.bf16 %v729_v10, %v729_v10  ;;  %v714_v17 = vmax.f32 %v614_v11, 0.0  ;;  %v730_v18 = vmax.f32 %v678_v12, 0.0 }
 0x129   : > { %874 = vst.msk [vmem:[%s1405_s22 + $0x20] sm:$0xf] %vm865_vm3, %v1114_v15  ;;  %890 = vst.msk [vmem:[%s1405_s22 + $0x60] sm:$0xf] %vm865_vm3, %v1130_v16  ;;  %v1115_v19 = vpack.c.bf16 %v714_v17, %v714_v17  ;;  %v1131_v20 = vpack.c.bf16 %v730_v18, %v730_v18 }
 0x12a   : > { %v618_v21 = vpop.f32.mrb[20].mxu0  ;;  %v682_v22 = vpop.f32.mrb[20].mxu1 }
 0x12b   : > { %875 = vst.msk [vmem:[%s1405_s22 + $0x24] sm:$0xf] %vm865_vm3, %v1115_v19  ;;  %891 = vst.msk [vmem:[%s1405_s22 + $0x64] sm:$0xf] %vm865_vm3, %v1131_v20  ;;  %v619_v23 = vadd.f32 %v1395_v47, %v618_v21  ;;  %v683_v24 = vadd.f32 %v1395_v47, %v682_v22  ;;  %v620_v25 = vpop.f32.mrb[21].mxu0  ;;  %v684_v26 = vpop.f32.mrb[21].mxu1 }
 0x12c   : > { %v621_v27 = vpop.f32.mrb[22].mxu0  ;;  %v685_v28 = vpop.f32.mrb[22].mxu1 }
 0x12d   : > { %v715_v29 = vmax.f32 %v619_v23, 0.0  ;;  %v731_v30 = vmax.f32 %v683_v24, 0.0  ;;  %v622_v31 = vadd.f32 %v1395_v47, %v621_v27  ;;  %v686_v32 = vadd.f32 %v1395_v47, %v685_v28  ;;  %v623_v33 = vpop.f32.mrb[23].mxu0  ;;  %v687_v34 = vpop.f32.mrb[23].mxu1 }
 0x12f   : > { %v1116_v35 = vpack.c.bf16 %v715_v29, %v715_v29  ;;  %v1132_v36 = vpack.c.bf16 %v731_v30, %v731_v30  ;;  %v716_v37 = vmax.f32 %v622_v31, 0.0  ;;  %v732_v38 = vmax.f32 %v686_v32, 0.0 }
 0x131   : > { %876 = vst.msk [vmem:[%s1405_s22 + $0x28] sm:$0xf] %vm865_vm3, %v1116_v35  ;;  %892 = vst.msk [vmem:[%s1405_s22 + $0x68] sm:$0xf] %vm865_vm3, %v1132_v36  ;;  %v1117_v39 = vpack.c.bf16 %v716_v37, %v716_v37  ;;  %v1133_v40 = vpack.c.bf16 %v732_v38, %v732_v38 }
 0x132   : > { %v626_v41 = vpop.f32.mrb[24].mxu0  ;;  %v690_v42 = vpop.f32.mrb[24].mxu1 }
 0x133   : > { %877 = vst.msk [vmem:[%s1405_s22 + $0x2c] sm:$0xf] %vm865_vm3, %v1117_v39  ;;  %893 = vst.msk [vmem:[%s1405_s22 + $0x6c] sm:$0xf] %vm865_vm3, %v1133_v40  ;;  %v627_v43 = vadd.f32 %v1395_v47, %v626_v41  ;;  %v691_v44 = vadd.f32 %v1395_v47, %v690_v42  ;;  %v628_v45 = vpop.f32.mrb[25].mxu0  ;;  %v692_v46 = vpop.f32.mrb[25].mxu1 }
 0x134   : > { %v629_v48 = vpop.f32.mrb[26].mxu0  ;;  %v693_v49 = vpop.f32.mrb[26].mxu1 }
 0x135   : > { %v717_v50 = vmax.f32 %v627_v43, 0.0  ;;  %v733_v51 = vmax.f32 %v691_v44, 0.0  ;;  %v630_v52 = vadd.f32 %v1395_v47, %v629_v48  ;;  %v694_v53 = vadd.f32 %v1395_v47, %v693_v49  ;;  %v631_v54 = vpop.f32.mrb[27].mxu0  ;;  %v695_v55 = vpop.f32.mrb[27].mxu1 }
 0x137   : > { %v1118_v56 = vpack.c.bf16 %v717_v50, %v717_v50  ;;  %v1134_v57 = vpack.c.bf16 %v733_v51, %v733_v51  ;;  %v718_v58 = vmax.f32 %v630_v52, 0.0  ;;  %v734_v59 = vmax.f32 %v694_v53, 0.0 }
 0x139   : > { %878 = vst.msk [vmem:[%s1405_s22 + $0x30] sm:$0xf] %vm865_vm3, %v1118_v56  ;;  %894 = vst.msk [vmem:[%s1405_s22 + $0x70] sm:$0xf] %vm865_vm3, %v1134_v57  ;;  %v1119_v60 = vpack.c.bf16 %v718_v58, %v718_v58  ;;  %v1135_v61 = vpack.c.bf16 %v734_v59, %v734_v59 }
 0x13a   : > { %v634_v62 = vpop.f32.mrb[28].mxu0  ;;  %v698_v63 = vpop.f32.mrb[28].mxu1 }
 0x13b   : > { %879 = vst.msk [vmem:[%s1405_s22 + $0x34] sm:$0xf] %vm865_vm3, %v1119_v60  ;;  %895 = vst.msk [vmem:[%s1405_s22 + $0x74] sm:$0xf] %vm865_vm3, %v1135_v61  ;;  %v635_v0 = vadd.f32 %v1395_v47, %v634_v62  ;;  %v699_v1 = vadd.f32 %v1395_v47, %v698_v63  ;;  %v636_v2 = vpop.f32.mrb[29].mxu0  ;;  %v700_v3 = vpop.f32.mrb[29].mxu1 }
 0x13c   : > { %v637_v4 = vpop.f32.mrb[30].mxu0  ;;  %v701_v5 = vpop.f32.mrb[30].mxu1 }
 0x13d   : > { %v719_v6 = vmax.f32 %v635_v0, 0.0  ;;  %v735_v7 = vmax.f32 %v699_v1, 0.0  ;;  %v638_v8 = vadd.f32 %v1395_v47, %v637_v4  ;;  %v702_v9 = vadd.f32 %v1395_v47, %v701_v5  ;;  %v639_v10 = vpop.f32.mrb[31].mxu0  ;;  %v703_v11 = vpop.f32.mrb[31].mxu1 }
 0x13f   : > { %v1120_v12 = vpack.c.bf16 %v719_v6, %v719_v6  ;;  %v1136_v13 = vpack.c.bf16 %v735_v7, %v735_v7  ;;  %v720_v14 = vmax.f32 %v638_v8, 0.0  ;;  %v736_v15 = vmax.f32 %v702_v9, 0.0 }
 0x141   : > { %880 = vst.msk [vmem:[%s1405_s22 + $0x38] sm:$0xf] %vm865_vm3, %v1120_v12  ;;  %896 = vst.msk [vmem:[%s1405_s22 + $0x78] sm:$0xf] %vm865_vm3, %v1136_v13  ;;  %v1121_v16 = vpack.c.bf16 %v720_v14, %v720_v14  ;;  %v1137_v17 = vpack.c.bf16 %v736_v15, %v736_v15 }
 0x143   : > { %881 = vst.msk [vmem:[%s1405_s22 + $0x3c] sm:$0xf] %vm865_vm3, %v1121_v16  ;;  %897 = vst.msk [vmem:[%s1405_s22 + $0x7c] sm:$0xf] %vm865_vm3, %v1137_v17 }
 0x144 PF: > { %s13_s14 = sadd.s32 1, %s1264_s14   ;;  %s1512_s12 = smov %s1260_s13 }
 0x145   : > { %p10_p5 = scmp.ge.s32.totalorder %s13_s14, 4   ;;  %s1513_s13 = smov %s1515_s15 }
 0x147   :  { %12 = sbr.rel (!%p10_p5) target bundleno = 2 (0x2), region = 68 }

</bundles_post_ra>
